<compile_context>
chip_gen: v5e
topology: v5e:2x2
jax: 0.10.0
libtpu: 0.0.40
codegen_flags: <defaults>
</compile_context>

<pallas_src>
import jax
import jax.numpy as jnp
from jax.experimental import pallas as pl
from jax.experimental.pallas import tpu as pltpu  # noqa: F401  (not needed at these sizes)


# ----------------------------------------------------------------------------
# Fused kernel: conv(as matmul) + bias + ReLU + global avg pool + embedding
#               Linear + L2 normalize, for the whole batch in one invocation.
# ----------------------------------------------------------------------------
def fused_contrastive_kernel(p_ref, cw_ref, cb_ref, pool_ref, ew_ref, eb_ref, o_ref):
    # p_ref:    (K, B*HW)    bf16   im2col patches, pixel axis lane-dense
    # cw_ref:   (C_mid, K)   bf16   conv weight, PyTorch (C_out, C_in*KH*KW) flatten
    # cb_ref:   (C_mid, 1)   f32    conv bias
    # pool_ref: (B, B*HW)    f32    per-batch averaging matrix (1/HW on own pixels)
    # ew_ref:   (C_mid, E)   bf16   embedding weight, transposed
    # eb_ref:   (1, E)       f32    embedding bias
    # o_ref:    (B, E)       f32    L2-normalized embeddings

    # (1) Conv2d(3x3, pad=1) over all pixels of all batch elements as one
    #     lane-dense MXU matmul (bf16 operands, f32 accumulation).
    y = jnp.dot(cw_ref[...], p_ref[...],
                preferred_element_type=jnp.float32)            # (C_mid, B*HW) f32
    y = jnp.maximum(y + cb_ref[...], 0.0)                      # bias + ReLU (f32)

    # (2) Global average pool per batch element on the MXU:
    #     pooled[b, c] = (1/HW) * sum_{pixels of batch b} y[c, pixel]
    #     (NT dot: contract the shared lane axis of pool_t and y.)
    pooled = jax.lax.dot_general(
        pool_ref[...], y,
        dimension_numbers=(((1,), (1,)), ((), ())),
        preferred_element_type=jnp.float32)                    # (B, C_mid) f32

    # (3) Embedding Linear (bf16 operands, f32 accumulation) + bias.
    z = jnp.dot(pooled.astype(jnp.bfloat16), ew_ref[...],
                preferred_element_type=jnp.float32) + eb_ref[...]   # (B, E) f32

    # (4) F.normalize(dim=1): z / max(||z||_2, 1e-12), via EUP rsqrt on the
    #     clamped squared norm (1e-24 == (1e-12)^2).
    nsq = jnp.sum(z * z, axis=1, keepdims=True)                # (B, 1) f32
    o_ref[...] = z * jax.lax.rsqrt(jnp.maximum(nsq, 1e-24))


# ----------------------------------------------------------------------------
# JAX glue
# ----------------------------------------------------------------------------
def im2col_T(x, kh=3, kw=3, pad=1):
    """(B, C, H, W) -> (C*kh*kw, B*H*W) patch matrix, transposed so the long
    pixel axis is the lane (last / fast) dim.  Row order k = ci*kh*kw + i*kw + j
    matches PyTorch's (C_out, C_in, KH, KW) weight flattening."""
    B, C, H, W = x.shape
    xp = jnp.pad(x, ((0, 0), (0, 0), (pad, pad), (pad, pad)))
    taps = [xp[:, :, i:i + H, j:j + W] for i in range(kh) for j in range(kw)]
    p = jnp.stack(taps, axis=2)                # (B, C, kh*kw, H, W)
    p = p.transpose(1, 2, 0, 3, 4)             # (C, kh*kw, B, H, W)
    return p.reshape(C * kh * kw, B * H * W)


def prepare_kernel_params(params):
    """Convert PyTorch-layout parameters to kernel-facing layouts ONCE
    (outside the jitted forward): reshape/transpose + bf16 cast of matmul
    operands, f32 biases shaped for in-kernel broadcast."""
    conv_w = params["conv_w"]                  # (C_mid, C_in, 3, 3)
    conv_b = params["conv_b"]                  # (C_mid,)
    emb_w = params["emb_w"]                    # (E, C_mid)  PyTorch Linear layout
    emb_b = params["emb_b"]                    # (E,)
    C_mid, C_in, KH, KW = conv_w.shape
    E = emb_w.shape[0]
    return {
        "conv_w_mat": conv_w.reshape(C_mid, C_in * KH * KW).astype(jnp.bfloat16),
        "conv_b": conv_b.reshape(C_mid, 1).astype(jnp.float32),
        "emb_w_t": emb_w.T.astype(jnp.bfloat16),          # (C_mid, E)
        "emb_b": emb_b.reshape(1, E).astype(jnp.float32),
    }


def contrastive_forward(x, kparams):
    """x: (B, C_in, H, W) float32 NCHW -> (B, E) L2-normalized embeddings."""
    B, C_in, H, W = x.shape
    cw = kparams["conv_w_mat"]                 # (C_mid, K) bf16
    cb = kparams["conv_b"]                     # (C_mid, 1) f32
    ewt = kparams["emb_w_t"]                   # (C_mid, E) bf16
    eb = kparams["emb_b"]                      # (1, E)     f32
    C_mid, K = cw.shape
    E = ewt.shape[1]
    HW = H * W
    BHW = B * HW

    # Lane-dense patch matrix (pixel axis last).  For large H,W this should be
    # formed in VMEM inside the kernel (9 accumulating tap matmuls) instead.
    patches_t = im2col_T(x).astype(jnp.bfloat16)                       # (K, B*HW)
    # Per-batch averaging matrix: pool_t[b, b'*HW + i] = (b == b') / HW.
    pool_t = jnp.repeat(jnp.eye(B, dtype=jnp.float32), HW, axis=1) / HW  # (B, B*HW)

    return pl.pallas_call(
        fused_contrastive_kernel,
        out_shape=jax.ShapeDtypeStruct((B, E), jnp.float32),
        in_specs=[
            pl.BlockSpec((K, BHW), lambda: (0, 0)),
            pl.BlockSpec((C_mid, K), lambda: (0, 0)),
            pl.BlockSpec((C_mid, 1), lambda: (0, 0)),
            pl.BlockSpec((B, BHW), lambda: (0, 0)),
            pl.BlockSpec((C_mid, E), lambda: (0, 0)),
            pl.BlockSpec((1, E), lambda: (0, 0)),
        ],
        out_specs=pl.BlockSpec((B, E), lambda: (0, 0)),
    )(patches_t, cw, cb, pool_t, ewt, eb)


def reference_forward(x, params):
    """Pure-JAX f32 reference of the same forward (PyTorch semantics)."""
    y = jax.lax.conv_general_dilated(
        x, params["conv_w"], window_strides=(1, 1), padding=((1, 1), (1, 1)),
        dimension_numbers=("NCHW", "OIHW", "NCHW"))
    y = jax.nn.relu(y + params["conv_b"][None, :, None, None])
    feats = jnp.mean(y, axis=(2, 3))                          # global avg pool
    z = feats @ params["emb_w"].T + params["emb_b"]
    n = jnp.sqrt(jnp.sum(z * z, axis=1, keepdims=True))
    return z / jnp.maximum(n, 1e-12)


def init_params(key, c_in=4, c_mid=32, embedding_dim=128):
    k1, k2, k3, k4 = jax.random.split(key, 4)
    return {
        "conv_w": 0.1 * jax.random.normal(k1, (c_mid, c_in, 3, 3), jnp.float32),
        "conv_b": 0.1 * jax.random.normal(k2, (c_mid,), jnp.float32),
        "emb_w": 0.1 * jax.random.normal(k3, (embedding_dim, c_mid), jnp.float32),
        "emb_b": 0.1 * jax.random.normal(k4, (embedding_dim,), jnp.float32),
    }


if __name__ == "__main__":
    key = jax.random.PRNGKey(0)
    kx, kp = jax.random.split(key)

    B, C_in, H, W = 2, 4, 16, 16
    x = jax.random.normal(kx, (B, C_in, H, W), jnp.float32)
    params = init_params(kp, c_in=C_in, c_mid=32, embedding_dim=128)
    kparams = prepare_kernel_params(params)       # one-time layout conversion

    out = jax.jit(contrastive_forward)(x, kparams)
    out = jax.block_until_ready(out)

    assert out.shape == (B, 128), out.shape
    # rows must be unit L2 norm (F.normalize semantics)
    norms = jnp.linalg.norm(out, axis=1)
    assert jnp.allclose(norms, 1.0, atol=1e-4), norms
    # bf16 MXU operands with f32 accumulation: loose-tolerance check vs f32 ref
    ref = reference_forward(x, params)
    err = float(jnp.max(jnp.abs(out - ref)))
    assert err < 5e-2, err
    print("KERNEL_OK")
</pallas_src>

<mosaic_0001>
module attributes {stable_mosaic.version = 11 : i64} {
  func.func @fused_contrastive_kernel(%arg0: memref<36x512xbf16, #tpu.memory_space<vmem>>, %arg1: memref<32x36xbf16, #tpu.memory_space<vmem>>, %arg2: memref<32x1xf32, #tpu.memory_space<vmem>>, %arg3: memref<2x512xf32, #tpu.memory_space<vmem>>, %arg4: memref<32x128xbf16, #tpu.memory_space<vmem>>, %arg5: memref<1x128xf32, #tpu.memory_space<vmem>>, %arg6: memref<2x128xf32, #tpu.memory_space<vmem>>) attributes {dimension_semantics = [], scalar_prefetch = 0 : i64, scratch_operands = 0 : i64, tpu.core_type = #tpu.core_type<tc>} {
    %c0 = arith.constant 0 : index
    %c0_0 = arith.constant 0 : index
    %0 = vector.load %arg1[%c0, %c0_0] : memref<32x36xbf16, #tpu.memory_space<vmem>>, vector<32x36xbf16>
    %c0_1 = arith.constant 0 : index
    %c0_2 = arith.constant 0 : index
    %1 = vector.load %arg0[%c0_1, %c0_2] : memref<36x512xbf16, #tpu.memory_space<vmem>>, vector<36x512xbf16>
    %cst = arith.constant dense<0.000000e+00> : vector<32x512xf32>
    %2 = tpu.matmul %0, %1, %cst {dimension_numbers = #tpu.dot_dimension_numbers<[1], [0], [0], [1], [0, 0, 1, 1], [], []>} : vector<32x36xbf16>, vector<36x512xbf16>, vector<32x512xf32> -> vector<32x512xf32>
    %c0_3 = arith.constant 0 : index
    %c0_4 = arith.constant 0 : index
    %3 = vector.load %arg2[%c0_3, %c0_4] : memref<32x1xf32, #tpu.memory_space<vmem>>, vector<32x1xf32>
    %4 = vector.broadcast %3 : vector<32x1xf32> to vector<32x512xf32>
    %5 = arith.addf %2, %4 : vector<32x512xf32>
    %cst_5 = arith.constant 0.000000e+00 : f32
    %6 = vector.broadcast %cst_5 : f32 to vector<32x512xf32>
    %7 = arith.maximumf %5, %6 : vector<32x512xf32>
    %c0_6 = arith.constant 0 : index
    %c0_7 = arith.constant 0 : index
    %8 = vector.load %arg3[%c0_6, %c0_7] : memref<2x512xf32, #tpu.memory_space<vmem>>, vector<2x512xf32>
    %cst_8 = arith.constant dense<0.000000e+00> : vector<2x32xf32>
    %9 = tpu.matmul %8, %7, %cst_8 {dimension_numbers = #tpu.dot_dimension_numbers<[1], [1], [0], [0], [0, 0, 1, 0], [], []>} : vector<2x512xf32>, vector<32x512xf32>, vector<2x32xf32> -> vector<2x32xf32>
    %10 = arith.truncf %9 : vector<2x32xf32> to vector<2x32xbf16>
    %c0_9 = arith.constant 0 : index
    %c0_10 = arith.constant 0 : index
    %11 = vector.load %arg4[%c0_9, %c0_10] : memref<32x128xbf16, #tpu.memory_space<vmem>>, vector<32x128xbf16>
    %cst_11 = arith.constant dense<0.000000e+00> : vector<2x128xf32>
    %12 = tpu.matmul %10, %11, %cst_11 {dimension_numbers = #tpu.dot_dimension_numbers<[1], [0], [0], [1], [0, 0, 1, 1], [], []>} : vector<2x32xbf16>, vector<32x128xbf16>, vector<2x128xf32> -> vector<2x128xf32>
    %c0_12 = arith.constant 0 : index
    %c0_13 = arith.constant 0 : index
    %13 = vector.load %arg5[%c0_12, %c0_13] : memref<1x128xf32, #tpu.memory_space<vmem>>, vector<1x128xf32>
    %14 = vector.broadcast %13 : vector<1x128xf32> to vector<2x128xf32>
    %15 = arith.addf %12, %14 : vector<2x128xf32>
    %16 = arith.mulf %15, %15 : vector<2x128xf32>
    %cst_14 = arith.constant dense<0.000000e+00> : vector<2xf32>
    %17 = vector.multi_reduction <add>, %16, %cst_14 [1] : vector<2x128xf32> to vector<2xf32>
    %18 = vector.shape_cast %17 : vector<2xf32> to vector<2x1xf32>
    %cst_15 = arith.constant 1.000000e-24 : f32
    %19 = vector.broadcast %cst_15 : f32 to vector<2x1xf32>
    %20 = arith.maximumf %18, %19 : vector<2x1xf32>
    %21 = math.rsqrt %20 : vector<2x1xf32>
    %22 = vector.broadcast %21 : vector<2x1xf32> to vector<2x128xf32>
    %23 = arith.mulf %15, %22 : vector<2x128xf32>
    %c0_16 = arith.constant 0 : index
    %c0_17 = arith.constant 0 : index
    %24 = vector.load %arg6[%c0_16, %c0_17] : memref<2x128xf32, #tpu.memory_space<vmem>>, vector<2x128xf32>
    tpu.vector_store %arg6[%c0_16, %c0_17], %23 {strides = array<i32>} : memref<2x128xf32, #tpu.memory_space<vmem>>, vector<2x128xf32>,
    return
  }
}

</mosaic_0001>

<bundles_post_ra>
// kernel: contrastive_forward.1
= control target key start
LH: loop header
LB: loop body
LE: loop exit
PB: predicated region body
PF: predicated region fallthrough
CT: control target
= control target key end

     0   :  { %vm130_vm0 = vcmask 1041408   ;;  %v499_v35 = vmov 0   ;;  %s628_s0 = inlined_call_operand.vmem [shape: bf16[36,512], index: 0, kind: input, shape index: {}]   ;;  %s629_s1 = inlined_call_operand.vmem [shape: bf16[32,36], index: 1, kind: input, shape index: {}]   ;;  %s630_s2 = inlined_call_operand.vmem [shape: f32[32,1], index: 2, kind: input, shape index: {}]   ;;  %s631_s3 = inlined_call_operand.vmem [shape: f32[2,512], index: 3, kind: input, shape index: {}]   ;;  %s632_s4 = inlined_call_operand.vmem [shape: bf16[32,128], index: 4, kind: input, shape index: {}]   ;;  %s633_s5 = inlined_call_operand.vmem [shape: f32[1,128], index: 5, kind: input, shape index: {}]   ;;  %s634_s6 = inlined_call_operand.hbm [shape: f32[2,128], index: 6, kind: output, shape index: {}]  }
   0x1   :  { %v37_v0 = vld [vmem:[%s628_s0 + $0x40] sm:$0x33]  ;;  %v38_v1 = vld [vmem:[%s628_s0 + $0x48] sm:$0x33]  ;;  %v462_v7 = vld [vmem:[%s628_s0 + $0x2c] sm:$0xf0]  ;;  %469 = vset.pattern.permute.xlu1 %v499_v35  ;;  %468 = vset.pattern.permute.xlu0 %v499_v35 }
   0x2   :  { %v99_v2 = vunpack.c.l.b16 %v37_v0  ;;  %v100_v3 = vunpack.c.h.b16 %v37_v0  ;;  %v101_v4 = vunpack.c.l.b16 %v38_v1  ;;  %v102_v5 = vunpack.c.h.b16 %v38_v1  ;;  %v423_v6 = vld [vmem:[%s628_s0 + $0x20] sm:$0xf]  ;;  %v460_v12 = vld [vmem:[%s628_s0 + $0x24] sm:$0xf]  ;;  %v425_v13 = vld [vmem:[%s628_s0 + $0x30] sm:$0xf0] }
   0x3   :  { %v431_v14 = vld [vmem:[%s628_s0 + $0x28] sm:$0xf]  ;;  %v463_v15 = vld [vmem:[%s628_s0 + $0x34] sm:$0xf0]  ;;  %v461_v16 = vld [vmem:[%s628_s0 + $0x2c] sm:$0xf]  ;;  %v424_v24 = vor.u32 %v462_v7, %v423_v6  ;;  %v428_v25 = vor.u32 %v460_v12, %v425_v13 }
   0x4   :  { %v111_v8 = vpack.c.b16 %v99_v2, %v99_v2  ;;  %v112_v9 = vpack.c.b16 %v100_v3, %v100_v3  ;;  %v113_v10 = vpack.c.b16 %v101_v4, %v101_v4  ;;  %v114_v11 = vpack.c.b16 %v102_v5, %v102_v5  ;;  %v433_v17 = vld [vmem:[%s628_s0 + $0x38] sm:$0xf0]  ;;  %v407_v22 = vld [vmem:[%s628_s0] sm:$0xf]  ;;  %v458_v23 = vld [vmem:[%s628_s0 + $0xc] sm:$0xf0] }
   0x5   :  { %v456_v26 = vld [vmem:[%s628_s0 + $0x4] sm:$0xf]  ;;  %v409_v27 = vld [vmem:[%s628_s0 + $0x10] sm:$0xf0]  ;;  %v415_v28 = vld [vmem:[%s628_s0 + $0x8] sm:$0xf]  ;;  %v432_v29 = vor.u32 %v463_v15, %v431_v14  ;;  %v436_v30 = vor.u32 %v461_v16, %v433_v17 }
   0x6   :  { %v132_v18 = vsel %vm130_vm0, %v111_v8, 0  ;;  %v135_v19 = vsel %vm130_vm0, %v112_v9, 0  ;;  %v138_v20 = vsel %vm130_vm0, %v113_v10, 0  ;;  %v141_v21 = vsel %vm130_vm0, %v114_v11, 0  ;;  %v459_v31 = vld [vmem:[%s628_s0 + $0x14] sm:$0xf0] }
   0x7   :  { %148 = vmatpush.bf16.msra.mxu0 %v132_v18  ;;  %167 = vmatpush.bf16.msra.mxu1 %v135_v19  ;;  %v457_v32 = vld [vmem:[%s628_s0 + $0xc] sm:$0xf]  ;;  %v417_v34 = vld [vmem:[%s628_s0 + $0x18] sm:$0xf0] }
   0x8   :  { %186 = vmatpush.bf16.msra.mxu2 %v138_v20  ;;  %205 = vmatpush.bf16.msra.mxu3 %v141_v21  ;;  %v40_v33 = vld [vmem:[%s630_s2 + $0x8] sm:$0xff]  ;;  %v42_v36 = vld [vmem:[%s630_s2 + $0x18] sm:$0xff] }
   0x9   :  { %50 = vperm.xlu1 %469, %v40_v33   ;;  %60 = vperm.xlu0 %468, %v42_v36  }
   0xa   :  { %11 = vsyncpa [#allocation3], 0  ;;  %v408_v37 = vor.u32 %v458_v23, %v407_v22  ;;  %v412_v38 = vor.u32 %v456_v26, %v409_v27  ;;  %v416_v39 = vor.u32 %v459_v31, %v415_v28  ;;  %v420_v40 = vor.u32 %v457_v32, %v417_v34  ;;  %v454_v41 = vld [vmem:[%s629_s1] sm:$0xff]  ;;  %v41_v43 = vld [vmem:[%s630_s2 + $0x10] sm:$0xff]  ;;  %s388_s27 = sshll.u32 %s634_s6, 4  ;;  %s389_s27 = int_to_ptr.hbm [resolvable:$true] %s388_s27 }
   0xb   :  { %149 = vmatpush.bf16.msra.mxu0 %v424_v24  ;;  %168 = vmatpush.bf16.msra.mxu1 %v428_v25  ;;  %vm123_vm1 = vcmask 293888   ;;  %v39_v42 = vld [vmem:[%s630_s2] sm:$0xff]  ;;  %v455_v44 = vld [vmem:[%s629_s1 + $0x8] sm:$0xff]  ;;  %vm347_vm2 = vcmask 261120  }
   0xc   :  { %187 = vmatpush.bf16.msra.mxu2 %v432_v29  ;;  %206 = vmatpush.bf16.msra.mxu3 %v436_v30  ;;  %v235_v51 = vld [vmem:[%s631_s3] sm:$0xff] }
   0xd   :  { %237 = vst [vmem:[#allocation1] ss:$4 sm:$0xff] %v235_v51 }
   0xf   :  { %150 = vmatpush.bf16.msra.mxu0 %v408_v37  ;;  %169 = vmatpush.bf16.msra.mxu1 %v412_v38  ;;  %v465_v38 = vld [vmem:[%s632_s4 + $0x8] sm:$0xff] }
  0x10   :  { %188 = vmatpush.bf16.msra.mxu2 %v416_v39  ;;  %207 = vmatpush.bf16.msra.mxu3 %v420_v40  ;;  %v464_v39 = vld [vmem:[%s632_s4] sm:$0xff]  ;;  %s500_s4 = smov [#allocation2]  }
  0x11   :  { %45 = vperm.xlu1 %469, %v39_v42   ;;  %55 = vperm.xlu0 %468, %v41_v43  }
  0x12   :  { %437 = vmatmul.msk.bf16.vlgmr.msra.gmra.mxu0 %vm123_vm1, %v454_v41  ;;  %439 = vmatmul.msk.bf16.vlgmr.msra.gmra.mxu1 %vm123_vm1, %v454_v41 }
  0x13   :  { %441 = vmatmul.msk.bf16.vlgmr.msra.gmra.mxu2 %vm123_vm1, %v454_v41  ;;  %443 = vmatmul.msk.bf16.vlgmr.msra.gmra.mxu3 %vm123_vm1, %v454_v41 }
  0x14   :  { %v238_v32 = vld.sshfl [vmem:[#allocation1] sm:$0xff pattern:$0x73625140]  ;;  %v239_v33 = vld.sshfl [vmem:[#allocation1 + $0x8] sm:$0xff pattern:$0x73625140] }
  0x15   :  { %v240_v36 = vld.sshfl [vmem:[#allocation1 + $0x10] sm:$0xff pattern:$0x73625140]  ;;  %v241_v37 = vld.sshfl [vmem:[#allocation1 + $0x18] sm:$0xff pattern:$0x73625140] }
  0x22   :  { %438 = vmatmul.msk.bf16.gmra.mxu0 %vm123_vm1, %v455_v44  ;;  %440 = vmatmul.msk.bf16.gmra.mxu1 %vm123_vm1, %v455_v44 }
  0x23   :  { %442 = vmatmul.msk.bf16.gmra.mxu2 %vm123_vm1, %v455_v44  ;;  %444 = vmatmul.msk.bf16.gmra.mxu3 %vm123_vm1, %v455_v44 }
  0x7b   :  { %v61_v52 = vpop.permute.xlu0 %60  ;;  %v51_v57 = vpop.permute.xlu1 %50 }
  0x83   :  { %v56_v0 = vpop.permute.xlu0 %55  ;;  %v46_v13 = vpop.permute.xlu1 %45 }
  0x8f   :  { %v152_v45 = vpop.f32.mrf.mxu0  ;;  %v171_v46 = vpop.f32.mrf.mxu1 }
  0x90   :  { %v153_v20 = vadd.f32 %v152_v45, %v46_v13  ;;  %v172_v21 = vadd.f32 %v171_v46, %v46_v13 }
  0x92   :  { %v219_v26 = vmax.f32 %v153_v20, 0.0  ;;  %v220_v27 = vmax.f32 %v172_v21, 0.0 }
  0x96   :  { %v190_v47 = vpop.f32.mrf.mxu2  ;;  %v209_v48 = vpop.f32.mrf.mxu3 }
  0x97   :  { %v154_v49 = vpop.f32.mrf.mxu0  ;;  %v173_v50 = vpop.f32.mrf.mxu1  ;;  %v191_v30 = vadd.f32 %v190_v47, %v46_v13  ;;  %v210_v31 = vadd.f32 %v209_v48, %v46_v13  ;;  %v470_v48 = vld [vmem:[%s633_s5] ss:$0 sm:$0xff]  ;;  %s386_s5 = sshll.u32 %s500_s4, 4  ;;  %s387_s5 = int_to_ptr.vmem [resolvable:$true] %s386_s5 }
  0x98   :  { %v155_v5 = vadd.f32 %v154_v49, %v51_v57  ;;  %v174_v6 = vadd.f32 %v173_v50, %v51_v57 }
  0x99   :  { %v221_v34 = vmax.f32 %v191_v30, 0.0  ;;  %v222_v35 = vmax.f32 %v210_v31, 0.0 }
  0x9a   :  { %v223_v18 = vmax.f32 %v155_v5, 0.0  ;;  %v224_v19 = vmax.f32 %v174_v6, 0.0 }
  0x9e   :  { %v192_v53 = vpop.f32.mrf.mxu2  ;;  %v211_v54 = vpop.f32.mrf.mxu3 }
  0x9f   :  { %v157_v55 = vpop.f32.mrf.mxu0  ;;  %v176_v56 = vpop.f32.mrf.mxu1  ;;  %v193_v22 = vadd.f32 %v192_v53, %v51_v57  ;;  %v212_v23 = vadd.f32 %v211_v54, %v51_v57 }
  0xa0   :  { %v158_v3 = vadd.f32 %v157_v55, %v56_v0  ;;  %v177_v4 = vadd.f32 %v176_v56, %v56_v0 }
  0xa1   :  { %v225_v28 = vmax.f32 %v193_v22, 0.0  ;;  %v226_v29 = vmax.f32 %v212_v23, 0.0 }
  0xa2   :  { %v227_v9 = vmax.f32 %v158_v3, 0.0  ;;  %v228_v10 = vmax.f32 %v177_v4, 0.0 }
  0xa6   :  { %v195_v58 = vpop.f32.mrf.mxu2  ;;  %v214_v59 = vpop.f32.mrf.mxu3 }
  0xa7   :  { %v159_v60 = vpop.f32.mrf.mxu0  ;;  %v178_v61 = vpop.f32.mrf.mxu1  ;;  %v196_v14 = vadd.f32 %v195_v58, %v56_v0  ;;  %v215_v15 = vadd.f32 %v214_v59, %v56_v0 }
  0xa8   :  { %v160_v62 = vadd.f32 %v159_v60, %v61_v52  ;;  %v179_v63 = vadd.f32 %v178_v61, %v61_v52 }
  0xa9   :  { %v229_v24 = vmax.f32 %v196_v14, 0.0  ;;  %v230_v25 = vmax.f32 %v215_v15, 0.0 }
  0xaa   :  { %v231_v1 = vmax.f32 %v160_v62, 0.0  ;;  %v232_v2 = vmax.f32 %v179_v63, 0.0 }
  0xac   :  { %258 = vmatpush.xpose.msrb.mxu0 %v231_v1  ;;  %278 = vmatpush.xpose.msrb.mxu1 %v232_v2 }
  0xae   :  { %v197_v7 = vpop.f32.mrf.mxu2  ;;  %v216_v8 = vpop.f32.mrf.mxu3 }
  0xaf   :  { %v198_v11 = vadd.f32 %v197_v7, %v61_v52  ;;  %v217_v12 = vadd.f32 %v216_v8, %v61_v52 }
  0xb0   :  { %259 = vmatpush.xpose.msrb.mxu0 %v227_v9  ;;  %279 = vmatpush.xpose.msrb.mxu1 %v228_v10 }
  0xb1   :  { %v233_v16 = vmax.f32 %v198_v11, 0.0  ;;  %v234_v17 = vmax.f32 %v217_v12, 0.0 }
  0xb3   :  { %298 = vmatpush.xpose.msrb.mxu2 %v233_v16  ;;  %318 = vmatpush.xpose.msrb.mxu3 %v234_v17 }
  0xb4   :  { %260 = vmatpush.xpose.msrb.mxu0 %v223_v18  ;;  %280 = vmatpush.xpose.msrb.mxu1 %v224_v19 }
  0xb7   :  { %299 = vmatpush.xpose.msrb.mxu2 %v229_v24  ;;  %319 = vmatpush.xpose.msrb.mxu3 %v230_v25 }
  0xb8   :  { %261 = vmatpush.xpose.msrb.mxu0 %v219_v26  ;;  %281 = vmatpush.xpose.msrb.mxu1 %v220_v27 }
  0xbb   :  { %300 = vmatpush.xpose.msrb.mxu2 %v225_v28  ;;  %320 = vmatpush.xpose.msrb.mxu3 %v226_v29 }
  0xbc   :  { %262 = vmatmul.f32.vlgmr.msrb.gmra.mxu0 %v238_v32  ;;  %282 = vmatmul.f32.vlgmr.msrb.gmra.mxu1 %v239_v33 }
  0xbd   :  { %357 = vmatpush.bf16.msra.mxu0 %v465_v38 }
  0xbf   :  { %301 = vmatpush.xpose.msrb.mxu2 %v221_v34  ;;  %321 = vmatpush.xpose.msrb.mxu3 %v222_v35 }
  0xc1   :  { %358 = vmatpush.bf16.msra.mxu0 %v464_v39 }
  0xc2   :  { %302 = vmatmul.f32.vlgmr.msrb.gmra.mxu2 %v240_v36  ;;  %322 = vmatmul.f32.vlgmr.msrb.gmra.mxu3 %v241_v37 }
 0x139   :  { %v263_v40 = vpop.f32.mrf.mxu0  ;;  %v283_v41 = vpop.f32.mrf.mxu1 }
 0x13a   :  { %v284_v42 = vadd.f32 %v283_v41, %v263_v40 }
 0x145   :  { %v303_v43 = vpop.f32.mrf.mxu2  ;;  %v323_v44 = vpop.f32.mrf.mxu3 }
 0x146   :  { %v304_v45 = vadd.f32 %v303_v43, %v284_v42 }
 0x148   :  { %v324_v46 = vadd.f32 %v323_v44, %v304_v45 }
 0x14a   :  { %v326_v47 = vpack.c.bf16 %v324_v46, %v324_v46 }
 0x14c   :  { %453 = vmatmul.msk.bf16.vlgmr.msra.gmra.mxu0 %vm347_vm2, %v326_v47 }
 0x1c9   :  { %v360_v49 = vpop.f32.mrf.mxu0 }
 0x1ca   :  { %v361_v50 = vadd.f32 %v470_v48, %v360_v49 }
 0x1cc   :  { %v364_v51 = vmul.f32 %v361_v50, %v361_v50 }
 0x1ce   :  { %v365_v52 = vsel %vm130_vm0, %v364_v51, 0.0 }
 0x1cf   :  { %366 = vadd.xlane.f32.xlu2 %v365_v52 }
 0x1d1   :  { %v362_v53 = vpop.f32.mrf.mxu0 }
 0x242   :  { %v367_v54 = vpop.xlane.xlu2 %366 }
 0x243   :  { %v368_v55 = vmax.f32 %v367_v54, 1e-24 }
 0x245   :  { %471 = vrsqrt.f32 %v368_v55  ;;  %vm375_vm4 = vweird.f32 %v368_v55 }
 0x24b   :  { %v472_v56 = vpop.eup %471 }
 0x24c   :  { %v370_v57 = vmul.f32 %v472_v56, %v368_v55  ;;  %vm376_vm3 = vweird.f32 %v472_v56 }
 0x24d   :  { %vm377_vm5 = vmor %vm375_vm4, %vm376_vm3 }
 0x24e   :  { %v371_v58 = vmul.f32 %v472_v56, %v370_v57 }
 0x250   :  { %v372_v59 = vmul.f32 0.5, %v371_v58 }
 0x252   :  { %v373_v60 = vsub.f32 1.5, %v372_v59 }
 0x254   :  { %v374_v61 = vmul.f32 %v472_v56, %v373_v60 }
 0x256   :  { %v378_v62 = vsel %vm377_vm5, %v472_v56, %v374_v61 }
 0x257   :  { %v379_v63 = vmul.f32 %v378_v62, %v361_v50 }
 0x259   :  { %380 = vst [vmem:[#allocation2] sm:$0x3] %v379_v63 }
 0x25a   :  { %391 = dma.vmem_to_hbm [thread:$0]  %s387_s5, 32, %s389_s27, [#allocation3]  }
 0x25b   :  { %497 = dma.done.wait [#allocation3], 32  }
 0x25c   :  { %498 = vsyncadd [#allocation3], 4294967264 }
 0x25d   :  { %396 = vsyncpa [#allocation3], 1 }

</bundles_post_ra>
